<compile_context>
chip_gen: v7x
topology: tpu7x:2x2x1
jax: 0.10.0
libtpu: 0.0.40
codegen_flags: <defaults>
</compile_context>

<pallas_src>
import jax
import jax.numpy as jnp
from jax.experimental import pallas as pl
from jax.experimental.pallas import tpu as pltpu


def _round_up(x, m):
    return ((x + m - 1) // m) * m


def _ce_sum_kernel(logits_ref, labels_ref, out_ref, acc_ref):
    """Sum-reduced cross entropy (ignore_index == -1) over one row tile.

    grid = (num_super, num_inner); the inner axis is the reduction axis.
    acc_ref : VMEM (row_tile, 1) f32 per-row partials, persistent across the
              inner axis; collapsed to a scalar only on the last inner step.
    out_ref : (1, 128) lane-dense per-superblock partial (all lanes equal;
              the wrapper reads lane 0).
    """
    i = pl.program_id(1)

    @pl.when(i == 0)
    def _():
        acc_ref[...] = jnp.zeros_like(acc_ref)

    logits = logits_ref[...].astype(jnp.float32)       # (TN, Vp) — cast on load only
    labels = labels_ref[...]                           # (TN, 1) int32
    tn, v = logits.shape

    # numerically stable log-sum-exp along the lane (class) axis
    m = jnp.max(logits, axis=-1, keepdims=True)                               # (TN, 1)
    lse = m + jnp.log(jnp.sum(jnp.exp(logits - m), axis=-1, keepdims=True))   # (TN, 1)

    # gather the logit at the label position via a broadcast compare on lanes
    col = jax.lax.broadcasted_iota(jnp.int32, (1, v), 1)                      # (1, Vp)
    onehot = col == labels                                                    # (TN, Vp)
    picked = jnp.sum(jnp.where(onehot, logits, 0.0), axis=-1, keepdims=True)  # (TN, 1)

    valid = labels != -1                                                      # ignore_index
    acc_ref[...] += jnp.where(valid, lse - picked, 0.0)

    @pl.when(i == pl.num_programs(1) - 1)
    def _():
        out_ref[...] = jnp.broadcast_to(jnp.sum(acc_ref[...]), out_ref.shape)


# ~32 MiB for the double-buffered logits block: fits v7x's 64 MiB VMEM with headroom
# and still yields >=128-row tiles at V~30k bf16 (near HBM roofline on v5e/v6e too).
_LOGITS_PIPELINE_BUDGET = 32 * 1024 * 1024
_MAX_ROW_TILE = 512


def _cross_entropy_sum(logits, labels, row_tile=None):
    """CrossEntropyLoss(ignore_index=-1, reduction='sum') via Pallas.

    logits : (N, V) float — kept in its native dtype (bf16 stays bf16 on HBM)
    labels : (N,)  int   — -1 == ignore
    """
    n, v = logits.shape
    itemsize = jnp.dtype(logits.dtype).itemsize

    # Lane-align the class dimension; padded columns get the dtype's most
    # negative value so they never win the max nor contribute to the exp-sum.
    vpad = _round_up(v, 128)
    if vpad != v:
        neg = jnp.finfo(logits.dtype).min
        logits = jnp.pad(logits, ((0, 0), (0, vpad - v)), constant_values=neg)

    if row_tile is None:
        # biggest row tile whose double-buffered logits block fits the budget
        row_tile = _LOGITS_PIPELINE_BUDGET // (2 * vpad * itemsize)
        row_tile = max(8, min(_MAX_ROW_TILE, (row_tile // 8) * 8))
    row_tile = min(row_tile, _round_up(n, 8))

    # Leading "parallel" superblock axis: lets a v7x megacore split the row blocks
    # across its two TensorCores; size 1 / harmless on single-TC chips.
    num_super = 2 if n > row_tile else 1
    npad = _round_up(n, row_tile * num_super)
    num_inner = npad // (row_tile * num_super)

    labels = labels.astype(jnp.int32)
    if npad != n:
        # padded rows carry label -1 -> masked out by the kernel's ignore check
        logits = jnp.pad(logits, ((0, npad - n), (0, 0)))
        labels = jnp.pad(labels, ((0, npad - n),), constant_values=-1)
    labels2 = labels.reshape(npad, 1)

    block_bytes = row_tile * vpad * itemsize
    vmem_bytes = int(min(100 * 1024 * 1024,
                         max(32 * 1024 * 1024, 2 * block_bytes + (8 << 20))))

    out = pl.pallas_call(
        _ce_sum_kernel,
        out_shape=jax.ShapeDtypeStruct((num_super, 128), jnp.float32),
        grid_spec=pltpu.PrefetchScalarGridSpec(
            num_scalar_prefetch=0,
            grid=(num_super, num_inner),
            in_specs=[
                pl.BlockSpec((row_tile, vpad), lambda s, i: (s * num_inner + i, 0)),
                pl.BlockSpec((row_tile, 1), lambda s, i: (s * num_inner + i, 0)),
            ],
            out_specs=pl.BlockSpec((1, 128), lambda s, i: (s, 0)),
            scratch_shapes=[pltpu.VMEM((row_tile, 1), jnp.float32)],
        ),
        compiler_params=pltpu.CompilerParams(
            dimension_semantics=("parallel", "arbitrary"),
            vmem_limit_bytes=vmem_bytes,
        ),
    )(logits, labels2)
    # per-superblock partial sums live in lane 0 of each output row
    return jnp.sum(out[:, 0])


def _ce_sum_jnp(logits, labels):
    """Plain-JAX sum CE with ignore_index=-1 (used for the tiny NSP head and as
    the correctness reference). A dedicated pallas_call for [B, 2] logits costs
    more in launch/pipeline setup than the entire computation."""
    logits = logits.astype(jnp.float32)
    lse = jax.nn.logsumexp(logits, axis=-1)
    safe = jnp.where(labels == -1, 0, labels)
    picked = jnp.take_along_axis(logits, safe[:, None], axis=-1)[:, 0]
    return jnp.sum(jnp.where(labels == -1, 0.0, lse - picked))


def bert_pretraining_criterion(prediction_scores, seq_relationship_score,
                               masked_lm_labels, next_sentence_labels,
                               vocab_size, sequence_output_is_dense=False):
    """JAX/Pallas equivalent of BertPretrainingCriterion.forward (dense=False path)."""
    # TODO(synk): sequence_output_is_dense=True path does a data-dependent boolean
    # gather (dynamic output size) before the loss; not implemented here.
    assert not sequence_output_is_dense

    mlm_logits = prediction_scores.reshape(-1, vocab_size)
    mlm_labels = masked_lm_labels.reshape(-1)
    masked_lm_loss = _cross_entropy_sum(mlm_logits, mlm_labels)

    nsp_logits = seq_relationship_score.reshape(-1, 2)
    nsp_labels = next_sentence_labels.reshape(-1)
    next_sentence_loss = _ce_sum_jnp(nsp_logits, nsp_labels)

    return masked_lm_loss + next_sentence_loss


def _reference_loss(prediction_scores, seq_relationship_score,
                    masked_lm_labels, next_sentence_labels, vocab_size):
    """Pure-JAX reference for correctness checking."""
    return (_ce_sum_jnp(prediction_scores.reshape(-1, vocab_size),
                        masked_lm_labels.reshape(-1))
            + _ce_sum_jnp(seq_relationship_score.reshape(-1, 2),
                          next_sentence_labels.reshape(-1)))


if __name__ == "__main__":
    def make_inputs(key, batch, seq, vocab, dtype):
        k1, k2, k3, k4, k5 = jax.random.split(key, 5)
        prediction_scores = jax.random.normal(k1, (batch, seq, vocab),
                                              dtype=jnp.float32).astype(dtype)
        seq_relationship_score = jax.random.normal(k2, (batch, 2),
                                                   dtype=jnp.float32).astype(dtype)
        masked_lm_labels = jnp.full((batch, seq), -1, dtype=jnp.int32)
        positions = jax.random.randint(k3, (batch, 3), 0, seq)
        values = jax.random.randint(k4, (batch, 3), 0, vocab)
        for b in range(batch):
            masked_lm_labels = masked_lm_labels.at[b, positions[b]].set(values[b])
        next_sentence_labels = jax.random.randint(k5, (batch,), 0, 2).astype(jnp.int32)
        return prediction_scores, seq_relationship_score, masked_lm_labels, next_sentence_labels

    key = jax.random.PRNGKey(0)
    k_a, k_b, k_c = jax.random.split(key, 3)

    # 1) small aligned shapes, f32
    ps, sr, ml, ns = make_inputs(k_a, batch=2, seq=8, vocab=128, dtype=jnp.float32)
    out1 = jax.block_until_ready(
        bert_pretraining_criterion(ps, sr, ml, ns, vocab_size=128))
    ref1 = _reference_loss(ps, sr, ml, ns, 128)
    assert jnp.allclose(out1, ref1, rtol=1e-5, atol=1e-4), (out1, ref1)

    # 2) unaligned rows/vocab + native bf16 logits (exercises lane/row padding)
    ps, sr, ml, ns = make_inputs(k_b, batch=2, seq=7, vocab=100, dtype=jnp.bfloat16)
    out2 = jax.block_until_ready(
        bert_pretraining_criterion(ps, sr, ml, ns, vocab_size=100))
    ref2 = _reference_loss(ps, sr, ml, ns, 100)
    assert jnp.allclose(out2, ref2, rtol=1e-4, atol=1e-3), (out2, ref2)

    # 3) multi-block reduction + 2-superblock parallel axis (forced tiny tile)
    logits = jax.random.normal(k_c, (64, 256), dtype=jnp.float32)
    labels = jax.random.randint(jax.random.fold_in(k_c, 1), (64,), -1, 256).astype(jnp.int32)
    out3 = jax.block_until_ready(_cross_entropy_sum(logits, labels, row_tile=8))
    ref3 = _ce_sum_jnp(logits, labels)
    assert jnp.allclose(out3, ref3, rtol=1e-5, atol=1e-4), (out3, ref3)

    print("KERNEL_OK")
</pallas_src>

<mosaic_0001>
module attributes {stable_mosaic.version = 11 : i64} {
  func.func @_ce_sum_kernel(%arg0: i32, %arg1: i32, %arg2: memref<16x128xf32, #tpu.memory_space<vmem>>, %arg3: memref<16x1xi32, #tpu.memory_space<vmem>>, %arg4: memref<1x128xf32, #tpu.memory_space<vmem>>, %arg5: memref<16x1xf32, #tpu.memory_space<vmem>>) attributes {dimension_semantics = [#tpu.dimension_semantics<parallel>, #tpu.dimension_semantics<arbitrary>], iteration_bounds = array<i64: 1, 1>, scalar_prefetch = 0 : i64, scratch_operands = 1 : i64, tpu.core_type = #tpu.core_type<tc>, window_params = [{transform_indices = @transform_0, window_bounds = array<i64: 16, 128>}, {transform_indices = @transform_1, window_bounds = array<i64: 16, 1>}, {transform_indices = @transform_2, window_bounds = array<i64: 1, 128>}]} {
    %c0_i32 = arith.constant 0 : i32
    %0 = arith.cmpi eq, %arg1, %c0_i32 : i32
    %1 = arith.extui %0 : i1 to i32
    %c0_i32_0 = arith.constant 0 : i32
    %2 = arith.cmpi ne, %1, %c0_i32_0 : i32
    scf.if %2 {
      %cst_14 = arith.constant 0.000000e+00 : f32
      %33 = vector.broadcast %cst_14 : f32 to vector<16x1xf32>
      %c0_15 = arith.constant 0 : index
      %c0_16 = arith.constant 0 : index
      %34 = vector.load %arg5[%c0_15, %c0_16] : memref<16x1xf32, #tpu.memory_space<vmem>>, vector<16x1xf32>
      tpu.vector_store %arg5[%c0_15, %c0_16], %33 {strides = array<i32>} : memref<16x1xf32, #tpu.memory_space<vmem>>, vector<16x1xf32>,
    } else {
    }
    %c0 = arith.constant 0 : index
    %c0_1 = arith.constant 0 : index
    %3 = vector.load %arg2[%c0, %c0_1] : memref<16x128xf32, #tpu.memory_space<vmem>>, vector<16x128xf32>
    %c0_2 = arith.constant 0 : index
    %c0_3 = arith.constant 0 : index
    %4 = vector.load %arg3[%c0_2, %c0_3] : memref<16x1xi32, #tpu.memory_space<vmem>>, vector<16x1xi32>
    %cst = arith.constant dense<0xFF800000> : vector<16xf32>
    %5 = vector.multi_reduction <maximumf>, %3, %cst [1] : vector<16x128xf32> to vector<16xf32>
    %6 = vector.shape_cast %5 : vector<16xf32> to vector<16x1xf32>
    %7 = vector.broadcast %6 : vector<16x1xf32> to vector<16x128xf32>
    %8 = arith.subf %3, %7 : vector<16x128xf32>
    %9 = math.exp %8 : vector<16x128xf32>
    %cst_4 = arith.constant dense<0.000000e+00> : vector<16xf32>
    %10 = vector.multi_reduction <add>, %9, %cst_4 [1] : vector<16x128xf32> to vector<16xf32>
    %11 = vector.shape_cast %10 : vector<16xf32> to vector<16x1xf32>
    %12 = math.log %11 : vector<16x1xf32>
    %13 = arith.addf %6, %12 : vector<16x1xf32>
    %14 = tpu.iota {dimensions = array<i32: 1>} : vector<1x128xi32>
    %15 = vector.broadcast %14 : vector<1x128xi32> to vector<16x128xi32>
    %16 = vector.broadcast %4 : vector<16x1xi32> to vector<16x128xi32>
    %17 = arith.cmpi eq, %15, %16 : vector<16x128xi32>
    %cst_5 = arith.constant 0.000000e+00 : f32
    %18 = vector.broadcast %cst_5 : f32 to vector<16x128xf32>
    %19 = arith.select %17, %3, %18 : vector<16x128xi1>, vector<16x128xf32>
    %cst_6 = arith.constant dense<0.000000e+00> : vector<16xf32>
    %20 = vector.multi_reduction <add>, %19, %cst_6 [1] : vector<16x128xf32> to vector<16xf32>
    %21 = vector.shape_cast %20 : vector<16xf32> to vector<16x1xf32>
    %c-1_i32 = arith.constant -1 : i32
    %22 = vector.broadcast %c-1_i32 : i32 to vector<16x1xi32>
    %23 = arith.cmpi ne, %4, %22 : vector<16x1xi32>
    %c0_7 = arith.constant 0 : index
    %c0_8 = arith.constant 0 : index
    %24 = vector.load %arg5[%c0_7, %c0_8] : memref<16x1xf32, #tpu.memory_space<vmem>>, vector<16x1xf32>
    %25 = arith.subf %13, %21 : vector<16x1xf32>
    %cst_9 = arith.constant 0.000000e+00 : f32
    %26 = vector.broadcast %cst_9 : f32 to vector<16x1xf32>
    %27 = arith.select %23, %25, %26 : vector<16x1xi1>, vector<16x1xf32>
    %28 = arith.addf %24, %27 : vector<16x1xf32>
    %c0_10 = arith.constant 0 : index
    %c0_11 = arith.constant 0 : index
    %29 = vector.load %arg5[%c0_10, %c0_11] : memref<16x1xf32, #tpu.memory_space<vmem>>, vector<16x1xf32>
    tpu.vector_store %arg5[%c0_10, %c0_11], %28 {strides = array<i32>} : memref<16x1xf32, #tpu.memory_space<vmem>>, vector<16x1xf32>,
    %c0_i32_12 = arith.constant 0 : i32
    %30 = arith.cmpi eq, %arg1, %c0_i32_12 : i32
    %31 = arith.extui %30 : i1 to i32
    %c0_i32_13 = arith.constant 0 : i32
    %32 = arith.cmpi ne, %31, %c0_i32_13 : i32
    scf.if %32 {
      %c0_14 = arith.constant 0 : index
      %c0_15 = arith.constant 0 : index
      %33 = vector.load %arg5[%c0_14, %c0_15] : memref<16x1xf32, #tpu.memory_space<vmem>>, vector<16x1xf32>
      %34 = vector.shape_cast %33 : vector<16x1xf32> to vector<1x16x1xf32>
      %cst_16 = arith.constant dense<0.000000e+00> : vector<1xf32>
      %35 = vector.multi_reduction <add>, %34, %cst_16 [1, 2] : vector<1x16x1xf32> to vector<1xf32>
      %36 = vector.shape_cast %35 : vector<1xf32> to vector<1x1x1xf32>
      %37 = vector.extract %36[0, 0, 0] : f32 from vector<1x1x1xf32>
      %38 = vector.broadcast %37 : f32 to vector<1x128xf32>
      %c0_17 = arith.constant 0 : index
      %c0_18 = arith.constant 0 : index
      %39 = vector.load %arg4[%c0_17, %c0_18] : memref<1x128xf32, #tpu.memory_space<vmem>>, vector<1x128xf32>
      tpu.vector_store %arg4[%c0_17, %c0_18], %38 {strides = array<i32>} : memref<1x128xf32, #tpu.memory_space<vmem>>, vector<1x128xf32>,
    } else {
    }
    return
  }
  func.func @transform_0(%arg0: i32, %arg1: i32) -> (i32, i32) {
    %c1_i32 = arith.constant 1 : i32
    %0 = arith.muli %arg0, %c1_i32 : i32
    %1 = arith.addi %0, %arg1 : i32
    %c0_i32 = arith.constant 0 : i32
    %c0_i32_0 = arith.constant 0 : i32
    return %1, %c0_i32 : i32, i32
  }
  func.func @transform_1(%arg0: i32, %arg1: i32) -> (i32, i32) {
    %c1_i32 = arith.constant 1 : i32
    %0 = arith.muli %arg0, %c1_i32 : i32
    %1 = arith.addi %0, %arg1 : i32
    %c0_i32 = arith.constant 0 : i32
    %c0_i32_0 = arith.constant 0 : i32
    return %1, %c0_i32 : i32, i32
  }
  func.func @transform_2(%arg0: i32, %arg1: i32) -> (i32, i32) {
    %c0_i32 = arith.constant 0 : i32
    %c0_i32_0 = arith.constant 0 : i32
    return %arg0, %c0_i32 : i32, i32
  }
}

</mosaic_0001>

<bundles_post_ra>
// kernel: tpu_custom_call.1
= control target key start
LH: loop header
LB: loop body
LE: loop exit
PB: predicated region body
PF: predicated region fallthrough
CT: control target
= control target key end

     0   :  { %v200_v2 = vmov 0   ;;  %s248_s0 = inlined_call_operand.vmem [shape: f32[16,128], index: 0, kind: input, shape index: {}]   ;;  %s249_s1 = inlined_call_operand.vmem [shape: s32[16,1], index: 1, kind: input, shape index: {}]   ;;  %s250_s2 = inlined_call_operand.hbm [shape: f32[1,128], index: 2, kind: output, shape index: {}]  }
   0x1   :  { %v63_v0 = vld [vmem:[%s248_s0] sm:$0xff]  ;;  %166 = vset.pattern.permute.xlu1 %v200_v2 }
   0x2   :  { %v65_v1 = vld [vmem:[%s249_s1] sm:$0xff]  ;;  %67 = vmax.xlane.f32.xlu0 %v63_v0 }
   0x3   :  { %7 = vsyncpa [#allocation4], 0  ;;  %v64_v3 = vld [vmem:[%s248_s0 + $0x8] sm:$0xff]  ;;  %90 = vperm.xlu1 %166, %v65_v1   ;;  %167 = vset.pattern.permute.xlu0 %v200_v2  ;;  %v87_v10 = vlaneseq  ;;  %vm60_vm2 = vcmask 7168   ;;  %v201_v19 = vmov 0.0   ;;  %vm103_vm3 = vcmp.ne.s32.totalorder %v65_v1, 4294967295 }
   0x4   :  { %v66_v4 = vld [vmem:[%s249_s1 + $0x8] sm:$0xff]  ;;  %61 = vst.msk [vmem:[#allocation2] sm:$0xff] %vm60_vm2, %v201_v19  ;;  %62 = vst.msk [vmem:[#allocation2 + $0x8] sm:$0xff] %vm60_vm2, %v201_v19  ;;  %s202_s0 = smov [#allocation3]  }
   0x5   :  { %v88_v13 = vand.u32 127, %v87_v10  ;;  %vm104_vm4 = vcmp.ne.s32.totalorder %v66_v4, 4294967295  ;;  %s141_s1 = sshll.u32 %s202_s0, 4  ;;  %s142_s1 = int_to_ptr.vmem [resolvable:$true] %s141_s1 }
   0x6   :  { %69 = vmax.xlane.f32.xlu0 %v64_v3  ;;  %s176_s18 = scalar_lea.vmem %s142_s1, 16  ;;  %s180_s19 = scalar_lea.vmem %s142_s1, 32 }
   0x7   :  { %93 = vperm.xlu1 %166, %v66_v4   ;;  %p177_p0 = scmp.ne.s32.totalorder %s142_s1, %s176_s18  ;;  %p181_p1 = scmp.lt.s32.totalorder %s142_s1, %s142_s1 }
   0x8   :  { %p182_p2 = scmp.lt.s32.totalorder %s180_s19, %s176_s18 }
   0xa   :  { %p183_p3 = por %p182_p2, %p181_p1 }
   0xb   :  { %v105_v28 = vld [vmem:[#allocation2] sm:$0xff]  ;;  %v106_v34 = vld [vmem:[#allocation2 + $0x8] sm:$0xff] }
   0xc   :  { %p184_p4 = pnand %p183_p3, %p177_p0 }
  0x82   :  { %v91_v12 = vpop.permute.xlu1 %90 }
  0x83   :  { %vm95_vm0 = vcmp.eq.s32.totalorder %v88_v13, %v91_v12 }
  0x84   :  { %v97_v16 = vsel %vm95_vm0, %v63_v0, 0.0 }
  0x86   :  { %v94_v15 = vpop.permute.xlu1 %93 }
  0x87   :  { %vm96_vm1 = vcmp.eq.s32.totalorder %v88_v13, %v94_v15 }
  0x88   :  { %v98_v18 = vsel %vm96_vm1, %v64_v3, 0.0 }
  0x8f   :  { %v68_v5 = vpop.xlane.xlu0 %67 }
  0x90   :  { %v71_v6 = vsub.f32 %v63_v0, %v68_v5 }
  0x92   :  { %v73_v7 = vmul.f32 1.442695, %v71_v6 }
  0x93   :  { %v70_v8 = vpop.xlane.xlu0 %69 }
  0x94   :  { %168 = vpow2.f32 %v73_v7  ;;  %v72_v9 = vsub.f32 %v64_v3, %v70_v8 }
  0x96   :  { %v75_v11 = vmul.f32 1.442695, %v72_v9 }
  0x98   :  { %170 = vpow2.f32 %v75_v11 }
  0x9e   :  { %v169_v14 = vpop.eup %168 }
  0x9f   :  { %77 = vadd.xlane.f32.xlu0 %v169_v14 }
  0xa2   :  { %v171_v17 = vpop.eup %170 }
  0xa3   :  { %79 = vadd.xlane.f32.xlu1 %v171_v17  ;;  %99 = vadd.xlane.f32.xlu0 %v97_v16 }
  0xa7   :  { %101 = vadd.xlane.f32.xlu0 %v98_v18 }
 0x12c   :  { %v78_v20 = vpop.xlane.xlu0 %77 }
 0x12d   :  { %172 = vlog2.f32 %v78_v20 }
 0x130   :  { %v80_v21 = vpop.xlane.xlu1 %79  ;;  %v100_v24 = vpop.xlane.xlu0 %99 }
 0x131   :  { %174 = vlog2.f32 %v80_v21 }
 0x134   :  { %v102_v33 = vpop.xlane.xlu0 %101 }
 0x137   :  { %v173_v22 = vpop.eup %172 }
 0x138   :  { %v82_v23 = vmul.f32 0.6931472, %v173_v22 }
 0x13a   :  { %v85_v25 = vadd.f32 %v82_v23, %v68_v5 }
 0x13b   :  { %v175_v26 = vpop.eup %174 }
 0x13c   :  { %v84_v27 = vmul.f32 0.6931472, %v175_v26  ;;  %v107_v29 = vsub.f32 %v85_v25, %v100_v24 }
 0x13e   :  { %v109_v30 = vsel %vm103_vm3, %v107_v29, 0.0  ;;  %v86_v31 = vadd.f32 %v84_v27, %v70_v8 }
 0x13f   :  { %v111_v32 = vadd.f32 %v109_v30, %v105_v28 }
 0x140   :  { %v108_v35 = vsub.f32 %v86_v31, %v102_v33 }
 0x141   :  { %114 = vst.msk [vmem:[#allocation2] sm:$0xff] %vm60_vm2, %v111_v32 }
 0x142   :  { %v110_v36 = vsel %vm104_vm4, %v108_v35, 0.0 }
 0x143   :  { %v112_v37 = vadd.f32 %v110_v36, %v106_v34 }
 0x145   :  { %115 = vst.msk [vmem:[#allocation2 + $0x8] sm:$0xff] %vm60_vm2, %v112_v37 }
 0x148   :  { %v119_v38 = vld [vmem:[#allocation2] sm:$0xff] }
 0x149   :  { %v121_v40 = vsel %vm60_vm2, %v119_v38, 0.0 }
 0x14c   :  { %v120_v39 = vld [vmem:[#allocation2 + $0x8] sm:$0xff] }
 0x14d   :  { %v122_v41 = vsel %vm60_vm2, %v120_v39, 0.0 }
 0x14e   :  { %v123_v42 = vadd.f32 %v122_v41, %v121_v40 }
 0x150   :  { %124 = vadd.xlane.f32.xlu0 %v123_v42 }
 0x1dd   :  { %v125_v43 = vpop.xlane.xlu0 %124 }
 0x1de   :  { %v126_v44 = vrot.slane %v125_v43, 4 }
 0x1e0   :  { %v127_v45 = vadd.f32 %v126_v44, %v125_v43 }
 0x1e2   :  { %v128_v46 = vrot.slane %v127_v45, 2 }
 0x1e4   :  { %v129_v47 = vadd.f32 %v128_v46, %v127_v45 }
 0x1e6   :  { %v130_v48 = vrot.slane %v129_v47, 1 }
 0x1e8   :  { %v131_v49 = vadd.f32 %v130_v48, %v129_v47 }
 0x1ea   :  { %161 = vpush %v131_v49 }
 0x21b   :  { %s162_s17 = spop %161 }
 0x21c   :  { %v133_v50 = vstv %s162_s17 }
 0x21d   :  { %134 = vst [vmem:[#allocation3] sm:$0x1] %v133_v50 }
 0x21e   :  { %187 = shalt.err (!%p184_p4)
}
 0x21f   :  { %s188_s22 = scalar_lea.hbm %s250_s2, 16 }
 0x220   :  { %p189_p5 = scmp.ne.s32.totalorder %s250_s2, %s188_s22  ;;  %p192_p6 = scmp.lt.u32.totalorder %s188_s22, %s250_s2 }
 0x222   :  { %p194_p7 = pnand %p192_p6, %p189_p5 }
 0x224   :  { %197 = shalt.err (!%p194_p7)
}
 0x225   :  { %144 = dma.vmem_to_hbm [thread:$0]  %s142_s1, 16, %s250_s2, [#allocation4]  }
 0x226   :  { %198 = dma.done.wait [#allocation4], 16  }
 0x227   :  { %199 = vsyncadd [#allocation4], 4294967280 }
 0x228   :  { %148 = vsyncpa [#allocation4], 1 }

</bundles_post_ra>
